<compile_context>
chip_gen: v6e
topology: v6e:2x2x1
jax: 0.10.0
libtpu: 0.0.40
codegen_flags: <defaults>
</compile_context>

<pallas_src>
import jax
import jax.numpy as jnp
from jax import lax
from jax.experimental import pallas as pl
from jax.experimental.pallas import tpu as pltpu


def value_net_kernel(x_ref, w1_ref, b1_ref, w2_ref, b2_ref, wv_ref, bv_ref, o_ref):
    # x_ref: (TB, D) row-major state tile.  The dot below puts the batch back
    # on the lane axis of the (F1, TB) activation.
    x = x_ref[...].astype(w1_ref.dtype)

    # fc1 + ReLU: contract the D axis of W1 (F1, D) with the D axis of x
    # (TB, D) -> (F1, TB).  bf16 operands, f32 accumulation on the MXU.
    h1 = lax.dot_general(w1_ref[...], x, (((1,), (1,)), ((), ())),
                         preferred_element_type=jnp.float32)
    h1 = jnp.maximum(h1 + b1_ref[...], 0.0)

    # fc2 + ReLU: (F2, F1) @ (F1, TB) -> (F2, TB).
    h2 = jnp.dot(w2_ref[...], h1.astype(w2_ref.dtype),
                 preferred_element_type=jnp.float32)
    h2 = jnp.maximum(h2 + b2_ref[...], 0.0)

    # fc_v (out_features == 1): VPU multiply + sublane reduction instead of a
    # 1-column MXU pass.  Lane-dense (1, TB) output row.
    v = jnp.sum(h2 * wv_ref[...], axis=0, keepdims=True) + bv_ref[0, 0]
    o_ref[...] = v.astype(o_ref.dtype)


def _pick_batch_tile(B):
    """Multiple of 128 (256 when large enough), capped at 2048, aiming for
    >= 2 grid steps so v7x's two TensorCores both get work."""
    half = pl.cdiv(B, 2)
    if half <= 128:
        return 128
    return int(min(pl.cdiv(half, 256) * 256, 2048))


def value_network_forward(state, params, *, batch_tile=None):
    """state: (B, input_dims) f32.  Returns (B, 1) f32."""
    w1, b1, w2, b2, wv, bv = params
    B, D = state.shape
    F1, F2 = w1.shape[0], w2.shape[0]

    if batch_tile is None:
        batch_tile = _pick_batch_tile(B)
    n_tiles = pl.cdiv(B, batch_tile)
    b_pad = n_tiles * batch_tile

    # Cheap zero-pad of the batch axis only (no transpose; skipped entirely
    # when B is already a tile multiple).  Padded rows are per-row independent
    # and sliced off below.
    x = state if b_pad == B else jnp.pad(state, ((0, b_pad - B), (0, 0)))

    def resident(shape):
        # Constant block index: DMA'd into VMEM once, resident across the grid.
        return pl.BlockSpec(shape, lambda i: (0, 0))

    w_bytes = sum(int(a.size) * jnp.dtype(a.dtype).itemsize
                  for a in (w1, b1, w2, b2, wv, bv))
    cost = pl.CostEstimate(
        flops=2 * b_pad * (D * F1 + F1 * F2 + F2),
        transcendentals=0,
        bytes_accessed=int(x.size) * jnp.dtype(x.dtype).itemsize
                       + w_bytes + b_pad * 4,
    )

    out = pl.pallas_call(
        value_net_kernel,
        out_shape=jax.ShapeDtypeStruct((1, b_pad), jnp.float32),
        grid_spec=pltpu.PrefetchScalarGridSpec(
            num_scalar_prefetch=0,
            grid=(n_tiles,),
            in_specs=[
                pl.BlockSpec((batch_tile, D), lambda i: (i, 0)),    # state tile
                resident(w1.shape), resident(b1.shape),             # VMEM-resident
                resident(w2.shape), resident(b2.shape),             #   weights/biases
                resident(wv.shape),
                pl.BlockSpec(memory_space=pltpu.MemorySpace.SMEM),  # bv scalar
            ],
            out_specs=pl.BlockSpec((1, batch_tile), lambda i: (0, i)),
        ),
        compiler_params=pltpu.CompilerParams(
            dimension_semantics=("parallel",),  # shard batch axis across TCs (v7x)
        ),
        cost_estimate=cost,
    )(x, w1, b1, w2, b2, wv, bv)

    return out[0, :B].reshape(B, 1)


def init_params(key, input_dims, fc1_dims=256, fc2_dims=256,
                weight_dtype=jnp.bfloat16):
    """PyTorch-default init: U(-1/sqrt(fan_in), +1/sqrt(fan_in)).

    w1/w2 are stored in PyTorch (out_features, in_features) layout and in
    `weight_dtype` (bf16 default: MXU-native on v5e/v6e/v7x, halves weight
    DMA; accumulation stays f32 in the kernel).  Biases and the fc_v column
    stay f32 -- they only touch the VPU (v5e has no bf16 VPU path).
    """
    ks = jax.random.split(key, 6)

    def lin(kw, kb, fan_in, fan_out, w_dtype):
        bound = 1.0 / (fan_in ** 0.5)
        w = jax.random.uniform(kw, (fan_out, fan_in), jnp.float32, -bound, bound)
        b = jax.random.uniform(kb, (fan_out, 1), jnp.float32, -bound, bound)
        return w.astype(w_dtype), b

    w1, b1 = lin(ks[0], ks[1], input_dims, fc1_dims, weight_dtype)
    w2, b2 = lin(ks[2], ks[3], fc1_dims, fc2_dims, weight_dtype)
    wv_row, bv = lin(ks[4], ks[5], fc2_dims, 1, jnp.float32)  # head stays f32
    wv = wv_row.T                                             # (fc2, 1) column
    return (w1, b1, w2, b2, wv, bv)

# TODO(synk): optimizer (Adam), checkpoint save/load and device placement from
# the PyTorch module are host-side training utilities, not forward-pass ops.


if __name__ == "__main__":
    key = jax.random.PRNGKey(0)
    k_param, k_state = jax.random.split(key)

    batch = 200          # not a tile multiple: exercises padding + 2 grid steps
    input_dims = 8
    fc1_dims = 256
    fc2_dims = 256

    params = init_params(k_param, input_dims, fc1_dims, fc2_dims)
    state = jax.random.normal(k_state, (batch, input_dims), dtype=jnp.float32)

    v = value_network_forward(state, params)
    v = jax.block_until_ready(v)

    # Pure-JAX reference using the same stored weights and the same cast points
    # as the kernel (bf16 matmul operands, f32 accumulation, f32 head).
    w1, b1, w2, b2, wv, bv = params
    xb = state.astype(w1.dtype)
    h1 = jnp.maximum(
        jnp.dot(xb, w1.T, preferred_element_type=jnp.float32) + b1.reshape(1, -1),
        0.0)
    h2 = jnp.maximum(
        jnp.dot(h1.astype(w2.dtype), w2.T, preferred_element_type=jnp.float32)
        + b2.reshape(1, -1), 0.0)
    v_ref = jnp.sum(h2 * wv[:, 0].reshape(1, -1), axis=1, keepdims=True) + bv[0, 0]

    assert v.shape == (batch, 1)
    max_err = float(jnp.max(jnp.abs(v - v_ref)))
    assert jnp.allclose(v, v_ref, atol=2e-3, rtol=2e-3), max_err

    print("KERNEL_OK")
</pallas_src>

<mosaic_0001>
module attributes {stable_mosaic.version = 11 : i64} {
  func.func @value_net_kernel(%arg0: i32, %arg1: memref<128x8xf32, #tpu.memory_space<vmem>>, %arg2: memref<256x8xbf16, #tpu.memory_space<vmem>>, %arg3: memref<256x1xf32, #tpu.memory_space<vmem>>, %arg4: memref<256x256xbf16, #tpu.memory_space<vmem>>, %arg5: memref<256x1xf32, #tpu.memory_space<vmem>>, %arg6: memref<256x1xf32, #tpu.memory_space<vmem>>, %arg7: memref<1x1xf32, #tpu.memory_space<smem>>, %arg8: memref<1x128xf32, #tpu.memory_space<vmem>>) attributes {dimension_semantics = [#tpu.dimension_semantics<parallel>], iteration_bounds = array<i64: 2>, scalar_prefetch = 0 : i64, scratch_operands = 0 : i64, tpu.core_type = #tpu.core_type<tc>, window_params = [{transform_indices = @transform_0, window_bounds = array<i64: 128, 8>}, {pipeline_mode = #tpu.pipeline_mode<synchronous>, transform_indices = @transform_1, window_bounds = array<i64: 256, 8>}, {pipeline_mode = #tpu.pipeline_mode<synchronous>, transform_indices = @transform_2, window_bounds = array<i64: 256, 1>}, {pipeline_mode = #tpu.pipeline_mode<synchronous>, transform_indices = @transform_3, window_bounds = array<i64: 256, 256>}, {pipeline_mode = #tpu.pipeline_mode<synchronous>, transform_indices = @transform_4, window_bounds = array<i64: 256, 1>}, {pipeline_mode = #tpu.pipeline_mode<synchronous>, transform_indices = @transform_5, window_bounds = array<i64: 256, 1>}, {transform_indices = @transform_6, window_bounds = array<i64: 1, 1>}, {transform_indices = @transform_7, window_bounds = array<i64: 1, 128>}]} {
    %c0 = arith.constant 0 : index
    %c0_0 = arith.constant 0 : index
    %0 = vector.load %arg1[%c0, %c0_0] : memref<128x8xf32, #tpu.memory_space<vmem>>, vector<128x8xf32>
    %1 = arith.truncf %0 : vector<128x8xf32> to vector<128x8xbf16>
    %c0_1 = arith.constant 0 : index
    %c0_2 = arith.constant 0 : index
    %2 = vector.load %arg2[%c0_1, %c0_2] : memref<256x8xbf16, #tpu.memory_space<vmem>>, vector<256x8xbf16>
    %cst = arith.constant dense<0.000000e+00> : vector<256x128xf32>
    %3 = tpu.matmul %2, %1, %cst {dimension_numbers = #tpu.dot_dimension_numbers<[1], [1], [0], [0], [0, 0, 1, 0], [], []>} : vector<256x8xbf16>, vector<128x8xbf16>, vector<256x128xf32> -> vector<256x128xf32>
    %c0_3 = arith.constant 0 : index
    %c0_4 = arith.constant 0 : index
    %4 = vector.load %arg3[%c0_3, %c0_4] : memref<256x1xf32, #tpu.memory_space<vmem>>, vector<256x1xf32>
    %5 = vector.broadcast %4 : vector<256x1xf32> to vector<256x128xf32>
    %6 = arith.addf %3, %5 : vector<256x128xf32>
    %cst_5 = arith.constant 0.000000e+00 : f32
    %7 = vector.broadcast %cst_5 : f32 to vector<256x128xf32>
    %8 = arith.maximumf %6, %7 : vector<256x128xf32>
    %c0_6 = arith.constant 0 : index
    %c0_7 = arith.constant 0 : index
    %9 = vector.load %arg4[%c0_6, %c0_7] : memref<256x256xbf16, #tpu.memory_space<vmem>>, vector<256x256xbf16>
    %10 = arith.truncf %8 : vector<256x128xf32> to vector<256x128xbf16>
    %cst_8 = arith.constant dense<0.000000e+00> : vector<256x128xf32>
    %11 = tpu.matmul %9, %10, %cst_8 {dimension_numbers = #tpu.dot_dimension_numbers<[1], [0], [0], [1], [0, 0, 1, 1], [], []>} : vector<256x256xbf16>, vector<256x128xbf16>, vector<256x128xf32> -> vector<256x128xf32>
    %c0_9 = arith.constant 0 : index
    %c0_10 = arith.constant 0 : index
    %12 = vector.load %arg5[%c0_9, %c0_10] : memref<256x1xf32, #tpu.memory_space<vmem>>, vector<256x1xf32>
    %13 = vector.broadcast %12 : vector<256x1xf32> to vector<256x128xf32>
    %14 = arith.addf %11, %13 : vector<256x128xf32>
    %cst_11 = arith.constant 0.000000e+00 : f32
    %15 = vector.broadcast %cst_11 : f32 to vector<256x128xf32>
    %16 = arith.maximumf %14, %15 : vector<256x128xf32>
    %c0_12 = arith.constant 0 : index
    %c0_13 = arith.constant 0 : index
    %17 = vector.load %arg6[%c0_12, %c0_13] : memref<256x1xf32, #tpu.memory_space<vmem>>, vector<256x1xf32>
    %18 = vector.broadcast %17 : vector<256x1xf32> to vector<256x128xf32>
    %19 = arith.mulf %16, %18 : vector<256x128xf32>
    %cst_14 = arith.constant dense<0.000000e+00> : vector<128xf32>
    %20 = vector.multi_reduction <add>, %19, %cst_14 [0] : vector<256x128xf32> to vector<128xf32>
    %21 = vector.shape_cast %20 : vector<128xf32> to vector<1x128xf32>
    %c0_15 = arith.constant 0 : index
    %c0_16 = arith.constant 0 : index
    %22 = memref.load %arg7[%c0_15, %c0_16] : memref<1x1xf32, #tpu.memory_space<smem>>
    %23 = vector.broadcast %22 : f32 to vector<1x128xf32>
    %24 = arith.addf %21, %23 : vector<1x128xf32>
    %c0_17 = arith.constant 0 : index
    %c0_18 = arith.constant 0 : index
    %25 = vector.load %arg8[%c0_17, %c0_18] : memref<1x128xf32, #tpu.memory_space<vmem>>, vector<1x128xf32>
    tpu.vector_store %arg8[%c0_17, %c0_18], %24 {strides = array<i32>} : memref<1x128xf32, #tpu.memory_space<vmem>>, vector<1x128xf32>,
    return
  }
  func.func @transform_0(%arg0: i32) -> (i32, i32) {
    %c0_i32 = arith.constant 0 : i32
    %c0_i32_0 = arith.constant 0 : i32
    return %arg0, %c0_i32 : i32, i32
  }
  func.func @transform_1(%arg0: i32) -> (i32, i32) {
    %c0_i32 = arith.constant 0 : i32
    %c0_i32_0 = arith.constant 0 : i32
    %c0_i32_1 = arith.constant 0 : i32
    return %c0_i32, %c0_i32_0 : i32, i32
  }
  func.func @transform_2(%arg0: i32) -> (i32, i32) {
    %c0_i32 = arith.constant 0 : i32
    %c0_i32_0 = arith.constant 0 : i32
    %c0_i32_1 = arith.constant 0 : i32
    return %c0_i32, %c0_i32_0 : i32, i32
  }
  func.func @transform_3(%arg0: i32) -> (i32, i32) {
    %c0_i32 = arith.constant 0 : i32
    %c0_i32_0 = arith.constant 0 : i32
    %c0_i32_1 = arith.constant 0 : i32
    return %c0_i32, %c0_i32_0 : i32, i32
  }
  func.func @transform_4(%arg0: i32) -> (i32, i32) {
    %c0_i32 = arith.constant 0 : i32
    %c0_i32_0 = arith.constant 0 : i32
    %c0_i32_1 = arith.constant 0 : i32
    return %c0_i32, %c0_i32_0 : i32, i32
  }
  func.func @transform_5(%arg0: i32) -> (i32, i32) {
    %c0_i32 = arith.constant 0 : i32
    %c0_i32_0 = arith.constant 0 : i32
    %c0_i32_1 = arith.constant 0 : i32
    return %c0_i32, %c0_i32_0 : i32, i32
  }
  func.func @transform_6(%arg0: i32) -> (i32, i32) {
    %c0_i32 = arith.constant 0 : i32
    %c0_i32_0 = arith.constant 0 : i32
    %c0_i32_1 = arith.constant 0 : i32
    return %c0_i32, %c0_i32_0 : i32, i32
  }
  func.func @transform_7(%arg0: i32) -> (i32, i32) {
    %c0_i32 = arith.constant 0 : i32
    %c0_i32_0 = arith.constant 0 : i32
    return %c0_i32, %arg0 : i32, i32
  }
}

</mosaic_0001>

<bundles_post_ra>
// kernel: tpu_custom_call.1
= control target key start
LH: loop header
LB: loop body
LE: loop exit
PB: predicated region body
PF: predicated region fallthrough
CT: control target
= control target key end

     0   :  { %s3100_s0 = inlined_call_operand.vmem [shape: f32[256,8], index: 0, kind: input, shape index: {}]   ;;  %s3101_s1 = inlined_call_operand.vmem [shape: bf16[256,8], index: 1, kind: input, shape index: {}]   ;;  %s3102_s2 = inlined_call_operand.vmem [shape: f32[256,1], index: 2, kind: input, shape index: {}]   ;;  %s3103_s3 = inlined_call_operand.vmem [shape: bf16[256,256], index: 3, kind: input, shape index: {}]   ;;  %s3104_s4 = inlined_call_operand.vmem [shape: f32[256,1], index: 4, kind: input, shape index: {}]   ;;  %s3105_s5 = inlined_call_operand.vmem [shape: f32[256,1], index: 5, kind: input, shape index: {}]   ;;  %s3106_s6 = inlined_call_operand.<no memory space> [shape: f32[1,1], index: 6, kind: input, shape index: {}]   ;;  %s3107_s7 = inlined_call_operand.hbm [shape: f32[1,256], index: 7, kind: output, shape index: {}]  }
   0x1   :  { %12 = sst [smem:[#allocation2]] %s3106_s6 }
   0x2   :  { %13 = vsyncpa [#allocation4], 0 }
   0x3   :  { %15 = vsyncpa [#allocation4 + $0x1], 0  ;;  %s2294_s26 = smov 0   ;;  %s2296_s27 = smov 0  }
   0x4   :  { %s2298_s28 = smov 0   ;;  %s2300_s29 = smov 0  }
   0x5 LB: > { %s1799_s6 = sadd.s32 4294967295, %s2247_s29   ;;  %s1800_s30 = sadd.s32 4294967294, %s2247_s29   ;;  %s2247_s29 = sphi %s2300_s29, %s3131_s29   ;;  %s2243_s28 = sphi %s2298_s28, %s3130_s28   ;;  %s2239_s27 = sphi %s2296_s27, %s3129_s27   ;;  %s2235_s26 = sphi %s2294_s26, %s3128_s26  }
   0x6   : > { %s2317_s8 = sadd.s32 1, %s2247_s29   ;;  %s180_s9 = sadd.s32 1, %s2243_s28 }
   0x7   : > { %s177_s10 = ssub.s32 %s2247_s29, %s2317_s8  ;;  %p190_p0 = scmp.ne.s32.totalorder %s2243_s28, %s2239_s27 }
   0x8   : > { %p178_p1 = scmp.eq.s32.totalorder %s177_s10, 0  ;;  %p191_p2 = scmp.eq.s32.totalorder %s1799_s6, 1 }
   0x9   : > { %p196_p3 = scmp.ne.s32.totalorder %s2239_s27, %s2235_s26  ;;  %p197_p4 = scmp.eq.s32.totalorder %s1800_s30, 1 }
   0xa   : > { %s2327_s11 = scalar_select %p178_p1, %s2243_s28, %s180_s9  }
   0xb   : > { %p2329_p5 = por %p191_p2, %p190_p0  ;;  %p2333_p6 = por %p197_p4, %p196_p3 }
   0xc   : > { %p1803_p7 = scmp.ge.s32.totalorder %s2247_s29, 1  ;;  %p242_p8 = scmp.lt.s32.totalorder %s2247_s29, 3 }
   0xe   : > { %p243_p9 = pnand %p1803_p7, %p242_p8 }
  0x10   : > { %246 = sbr.rel (%p243_p9) target bundleno = 727 (0x2d7), region = 48 }
  0x15   : > { %v366_v0 = vld [vmem:[%s3102_s2 + $0xf0] sm:$0xff]  ;;  %s2345_s18 = sshll.u32 %s1799_s6, 4  ;;  %v2249_v2 = vmov 0   ;;  %v367_v3 = vld [vmem:[%s3102_s2 + $0xf8] sm:$0xff]  ;;  %v364_v5 = vld [vmem:[%s3102_s2 + $0xe0] sm:$0xff]  ;;  %vm608_vm0 = vcmask 64512  }
  0x16   : > { %v350_v1 = vld [vmem:[%s3102_s2 + $0x70] sm:$0xff]  ;;  %2122 = vset.pattern.permute.xlu1 %v2249_v2  ;;  %2121 = vset.pattern.permute.xlu0 %v2249_v2  ;;  %p274_p10 = scmp.lt.s32.totalorder %s2345_s18, 31  ;;  %v351_v4 = vld [vmem:[%s3102_s2 + $0x78] sm:$0xff]  ;;  %v365_v6 = vld [vmem:[%s3102_s2 + $0xe8] sm:$0xff]  ;;  %s1728_s6 = sld [smem:[#allocation2]] }
  0x17   : > { %520 = vperm.xlu0 %2121, %v366_v0   ;;  %440 = vperm.xlu1 %2122, %v350_v1   ;;  %v349_v14 = vld [vmem:[%s3102_s2 + $0x68] sm:$0xff]  ;;  %v348_v15 = vld [vmem:[%s3102_s2 + $0x60] sm:$0xff]  ;;  %v363_v18 = vld [vmem:[%s3102_s2 + $0xd8] sm:$0xff]  ;;  %s271_s30 = sand.u32 1, %s2239_s27   ;;  %s1743_s16 = scalar_lea.hbm %s3107_s7, %s2345_s18 }
  0x18   : > { %s275_s23 = scalar_select %p274_p10, %s2345_s18, 31  ;;  %v362_v19 = vld [vmem:[%s3102_s2 + $0xd0] sm:$0xff]  ;;  %v347_v22 = vld [vmem:[%s3102_s2 + $0x58] sm:$0xff]  ;;  %v2123_v23 = vld [vmem:[%s3101_s1] sm:$0xff]  }
  0x19   : > { %v346_v24 = vld [vmem:[%s3102_s2 + $0x50] sm:$0xff]  ;;  %2025 = vmatprep.mubr.msk.bf16.mxu0 %vm608_vm0, %v2123_v23  ;;  %v361_v27 = vld [vmem:[%s3102_s2 + $0xc8] sm:$0xff]  ;;  %v360_v28 = vld [vmem:[%s3102_s2 + $0xc0] sm:$0xff]  ;;  %s272_s9 = scalar_lea.vmem [#allocation3], %s271_s30  ;;  %s1733_s17 = scalar_lea.sflag [#allocation4], %s271_s30 }
  0x1a   : > { %s1805_s24 = sshll.u32 %s275_s23, 3  ;;  %v345_v31 = vld [vmem:[%s3102_s2 + $0x48] sm:$0xff]  ;;  %v344_v32 = vld [vmem:[%s3102_s2 + $0x40] sm:$0xff]  ;;  %v359_v35 = vld [vmem:[%s3102_s2 + $0xb8] sm:$0xff]  ;;  %s1745_s10 = sshll.u32 %s272_s9, 4  ;;  %s1746_s10 = int_to_ptr.vmem [resolvable:$true] %s1745_s10 }
  0x1b   : > { %525 = vperm.xlu0 %2121, %v367_v3   ;;  %445 = vperm.xlu1 %2122, %v351_v4   ;;  %s2364_s15 = scalar_lea.vmem %s3100_s0, %s1805_s24  ;;  %v358_v36 = vld [vmem:[%s3102_s2 + $0xb0] sm:$0xff]  ;;  %v343_v39 = vld [vmem:[%s3102_s2 + $0x38] sm:$0xff]  ;;  %v357_v41 = vld [vmem:[%s3102_s2 + $0xa8] sm:$0xff]  ;;  %s2187_s19 = scalar_lea.vmem %s1746_s10, 16 }
  0x1c   : > { %v294_v7 = vld [vmem:[%s2364_s15 + $0x70] sm:$0xff]  ;;  %v295_v8 = vld [vmem:[%s2364_s15 + $0x78] sm:$0xff]  ;;  %v292_v9 = vld [vmem:[%s2364_s15 + $0x60] sm:$0xff]  ;;  %p2188_p11 = scmp.ne.s32.totalorder %s1746_s10, %s2187_s19  ;;  %s2250_s20 = smov [#allocation3]  }
  0x1d   : > { %v303_v10 = vpack.c.bf16 %v295_v8, %v294_v7  ;;  %v293_v11 = vld [vmem:[%s2364_s15 + $0x68] sm:$0xff]  ;;  %v290_v16 = vld [vmem:[%s2364_s15 + $0x50] sm:$0xff]  ;;  %v291_v17 = vld [vmem:[%s2364_s15 + $0x58] sm:$0xff]  ;;  %s2191_s21 = sshll.u32 %s2250_s20, 4  ;;  %s2192_s21 = int_to_ptr.vmem [resolvable:$false] %s2191_s21 }
  0x1e   : > { %v302_v12 = vpack.c.bf16 %v293_v11, %v292_v9  ;;  %v301_v21 = vpack.c.bf16 %v291_v17, %v290_v16  ;;  %v288_v25 = vld [vmem:[%s2364_s15 + $0x40] sm:$0xff]  ;;  %v289_v26 = vld [vmem:[%s2364_s15 + $0x48] sm:$0xff]  ;;  %v286_v33 = vld [vmem:[%s2364_s15 + $0x30] sm:$0xff]  ;;  %p2189_p12 = pnand %p2188_p11, %p2329_p5  ;;  %s2193_s22 = scalar_lea.vmem %s2192_s21, 32 }
  0x1f   : > { %510 = vperm.xlu0 %2121, %v364_v5   ;;  %515 = vperm.xlu1 %2122, %v365_v6   ;;  %v679_v13 = vsel %vm608_vm0, %v303_v10, 0  ;;  %v300_v30 = vpack.c.bf16 %v289_v26, %v288_v25  ;;  %v287_v34 = vld [vmem:[%s2364_s15 + $0x38] sm:$0xff]  ;;  %v342_v40 = vld [vmem:[%s3102_s2 + $0x30] sm:$0xff]  ;;  %v284_v42 = vld [vmem:[%s2364_s15 + $0x20] sm:$0xff]  ;;  %p2194_p0 = scmp.lt.s32.totalorder %s1746_s10, %s2192_s21  ;;  %p2195_p1 = scmp.lt.s32.totalorder %s2193_s22, %s2187_s19 }
  0x20   : > { %2073 = vmatprep.subr.msk.bf16.mxu0 %vm608_vm0, %v303_v10  ;;  %v676_v20 = vsel %vm608_vm0, %v302_v12, 0  ;;  %v673_v29 = vsel %vm608_vm0, %v301_v21, 0  ;;  %v299_v38 = vpack.c.bf16 %v287_v34, %v286_v33  ;;  %v285_v43 = vld [vmem:[%s2364_s15 + $0x28] sm:$0xff]  ;;  %v356_v44 = vld [vmem:[%s3102_s2 + $0xa0] sm:$0xff]  ;;  %v282_v49 = vld [vmem:[%s2364_s15 + $0x10] sm:$0xff]  ;;  %p2190_p13 = pneg %p2189_p12 }
  0x21   : > { %2010 = vmatpush3.bf16.xpose.msra.mxu0 %v679_v13  ;;  %v670_v37 = vsel %vm608_vm0, %v300_v30, 0  ;;  %v298_v46 = vpack.c.bf16 %v285_v43, %v284_v42  ;;  %v341_v47 = vld [vmem:[%s3102_s2 + $0x28] sm:$0xff]  ;;  %v340_v48 = vld [vmem:[%s3102_s2 + $0x20] sm:$0xff]  ;;  %v283_v50 = vld [vmem:[%s2364_s15 + $0x18] sm:$0xff]  ;;  %p2196_p2 = por %p2195_p1, %p2194_p0 }
  0x22   : > { %2074 = vmatprep.subr.msk.bf16.mxu0 %vm608_vm0, %v302_v12  ;;  %v667_v45 = vsel %vm608_vm0, %v299_v38, 0  ;;  %v355_v51 = vld [vmem:[%s3102_s2 + $0x98] sm:$0xff]  ;;  %v354_v52 = vld [vmem:[%s3102_s2 + $0x90] sm:$0xff]  ;;  %v297_v54 = vpack.c.bf16 %v283_v50, %v282_v49  ;;  %v353_v57 = vld [vmem:[%s3102_s2 + $0x88] sm:$0xff] }
  0x23   : > { %435 = vperm.xlu1 %2122, %v349_v14   ;;  %430 = vperm.xlu0 %2121, %v348_v15   ;;  %v664_v53 = vsel %vm608_vm0, %v298_v46, 0  ;;  %v339_v55 = vld [vmem:[%s3102_s2 + $0x18] sm:$0xff]  ;;  %v338_v56 = vld [vmem:[%s3102_s2 + $0x10] sm:$0xff]  ;;  %v352_v58 = vld [vmem:[%s3102_s2 + $0x80] sm:$0xff]  ;;  %p2197_p3 = pnand %p2196_p2, %p2190_p13 }
  0x24   : > { %v280_v59 = vld [vmem:[%s2364_s15] sm:$0xff]  ;;  %v281_v60 = vld [vmem:[%s2364_s15 + $0x8] sm:$0xff]  ;;  %v661_v61 = vsel %vm608_vm0, %v297_v54, 0  ;;  %v925_v4 = vld [vmem:[%s3104_s4 + $0x18] sm:$0xff] }
  0x25   : > { %v337_v62 = vld [vmem:[%s3102_s2 + $0x8] sm:$0xff]  ;;  %v296_v63 = vpack.c.bf16 %v281_v60, %v280_v59  ;;  %v336_v0 = vld [vmem:[%s3102_s2] sm:$0xff]  ;;  %v924_v5 = vld [vmem:[%s3104_s4 + $0x10] sm:$0xff] }
  0x26   : > { %v923_v1 = vld [vmem:[%s3104_s4 + $0x8] sm:$0xff]  ;;  %v922_v2 = vld [vmem:[%s3104_s4] sm:$0xff]  ;;  %v2125_v9 = vld [vmem:[%s3101_s1 + $0x10] sm:$0xff]  }
  0x27   : > { %505 = vperm.xlu1 %2122, %v363_v18   ;;  %500 = vperm.xlu0 %2121, %v362_v19   ;;  %v658_v3 = vsel %vm608_vm0, %v296_v63, 0  ;;  %v927_v6 = vld [vmem:[%s3104_s4 + $0x28] sm:$0xff]  ;;  %v926_v7 = vld [vmem:[%s3104_s4 + $0x20] sm:$0xff]  ;;  %v929_v10 = vld [vmem:[%s3104_s4 + $0x38] sm:$0xff] }
  0x28   : > { %v2124_v8 = vld [vmem:[%s3101_s1 + $0x8] sm:$0xff]   ;;  %v928_v11 = vld [vmem:[%s3104_s4 + $0x30] sm:$0xff]  ;;  %v930_v13 = vld [vmem:[%s3104_s4 + $0x40] sm:$0xff] }
  0x29   : > { %2012 = vmatpush3.bf16.xpose.msra.mxu0 %v676_v20  ;;  %v931_v12 = vld [vmem:[%s3104_s4 + $0x48] sm:$0xff]  ;;  %v2126_v14 = vld [vmem:[%s3101_s1 + $0x18] sm:$0xff]   ;;  %v2127_v15 = vld [vmem:[%s3101_s1 + $0x20] sm:$0xff]  }
  0x2a   : > { %2075 = vmatprep.subr.msk.bf16.mxu0 %vm608_vm0, %v301_v21  ;;  %v933_v16 = vld [vmem:[%s3104_s4 + $0x58] sm:$0xff]  ;;  %v932_v17 = vld [vmem:[%s3104_s4 + $0x50] sm:$0xff]  ;;  %v935_v18 = vld [vmem:[%s3104_s4 + $0x68] sm:$0xff] }
  0x2b   : > { %425 = vperm.xlu1 %2122, %v347_v22   ;;  %420 = vperm.xlu0 %2121, %v346_v24   ;;  %v934_v19 = vld [vmem:[%s3104_s4 + $0x60] sm:$0xff]  ;;  %v2128_v20 = vld [vmem:[%s3101_s1 + $0x28] sm:$0xff]   ;;  %v2129_v21 = vld [vmem:[%s3101_s1 + $0x30] sm:$0xff]  }
  0x2c   : > { %v937_v22 = vld [vmem:[%s3104_s4 + $0x78] sm:$0xff]  ;;  %v936_v23 = vld [vmem:[%s3104_s4 + $0x70] sm:$0xff]  ;;  %v939_v24 = vld [vmem:[%s3104_s4 + $0x88] sm:$0xff] }
  0x2d   : > { %v938_v25 = vld [vmem:[%s3104_s4 + $0x80] sm:$0xff]  ;;  %v2130_v26 = vld [vmem:[%s3101_s1 + $0x38] sm:$0xff]   ;;  %v2133_v33 = vld [vmem:[%s3101_s1 + $0x50] sm:$0xff]  }
  0x2e   : > { %v945_v34 = vld [vmem:[%s3104_s4 + $0xb8] sm:$0xff]  ;;  %v1467_v42 = vld [vmem:[%s3105_s5] sm:$0xff]  ;;  %v1481_v59 = vld [vmem:[%s3105_s5 + $0x70] sm:$0xff] }
  0x2f   : > { %495 = vperm.xlu1 %2122, %v361_v27   ;;  %490 = vperm.xlu0 %2121, %v360_v28   ;;  %v2131_v27 = vld [vmem:[%s3101_s1 + $0x40] sm:$0xff]   ;;  %v941_v28 = vld [vmem:[%s3104_s4 + $0x98] sm:$0xff]  ;;  %v1480_v60 = vld [vmem:[%s3105_s5 + $0x68] sm:$0xff] }
  0x30   : > { %v950_v43 = vld [vmem:[%s3104_s4 + $0xe0] sm:$0xff]  ;;  %v1470_v49 = vld [vmem:[%s3105_s5 + $0x18] sm:$0xff] }
  0x31   : > { %2014 = vmatpush3.bf16.xpose.msra.mxu0 %v673_v29  ;;  %v940_v29 = vld [vmem:[%s3104_s4 + $0x90] sm:$0xff]  ;;  %v2138_v50 = vld [vmem:[%s3101_s1 + $0x78] sm:$0xff]  }
  0x32   : > { %2076 = vmatprep.subr.msk.bf16.mxu0 %vm608_vm0, %v300_v30  ;;  %v943_v30 = vld [vmem:[%s3104_s4 + $0xa8] sm:$0xff] }
  0x33   : > { %415 = vperm.xlu1 %2122, %v345_v31   ;;  %410 = vperm.xlu0 %2121, %v344_v32   ;;  %v942_v31 = vld [vmem:[%s3104_s4 + $0xa0] sm:$0xff]  ;;  %v2132_v32 = vld [vmem:[%s3101_s1 + $0x48] sm:$0xff]  }
  0x37   : > { %485 = vperm.xlu1 %2122, %v359_v35   ;;  %480 = vperm.xlu0 %2121, %v358_v36   ;;  %v944_v35 = vld [vmem:[%s3104_s4 + $0xb0] sm:$0xff]  ;;  %v947_v36 = vld [vmem:[%s3104_s4 + $0xc8] sm:$0xff] }
  0x39   : > { %2016 = vmatpush3.bf16.xpose.msra.mxu0 %v670_v37  ;;  %v946_v37 = vld [vmem:[%s3104_s4 + $0xc0] sm:$0xff] }
  0x3a   : > { %2077 = vmatprep.subr.msk.bf16.mxu0 %vm608_vm0, %v299_v38  ;;  %v2134_v38 = vld [vmem:[%s3101_s1 + $0x58] sm:$0xff]  }
  0x3b   : > { %405 = vperm.xlu1 %2122, %v343_v39   ;;  %400 = vperm.xlu0 %2121, %v342_v40   ;;  %v2135_v39 = vld [vmem:[%s3101_s1 + $0x60] sm:$0xff]   ;;  %v949_v40 = vld [vmem:[%s3104_s4 + $0xd8] sm:$0xff] }
  0x3f   : > { %475 = vperm.xlu1 %2122, %v357_v41   ;;  %470 = vperm.xlu0 %2121, %v356_v44   ;;  %v948_v41 = vld [vmem:[%s3104_s4 + $0xd0] sm:$0xff]  ;;  %v2136_v44 = vld [vmem:[%s3101_s1 + $0x68] sm:$0xff]  }
  0x41   : > { %2018 = vmatpush3.bf16.xpose.msra.mxu0 %v667_v45  ;;  %v2137_v45 = vld [vmem:[%s3101_s1 + $0x70] sm:$0xff]  }
  0x42   : > { %2078 = vmatprep.subr.msk.bf16.mxu0 %vm608_vm0, %v298_v46  ;;  %v1469_v46 = vld [vmem:[%s3105_s5 + $0x10] sm:$0xff] }
  0x43   : > { %395 = vperm.xlu1 %2122, %v341_v47   ;;  %390 = vperm.xlu0 %2121, %v340_v48   ;;  %v1468_v47 = vld [vmem:[%s3105_s5 + $0x8] sm:$0xff]  ;;  %v1471_v48 = vld [vmem:[%s3105_s5 + $0x20] sm:$0xff] }
  0x47   : > { %465 = vperm.xlu1 %2122, %v355_v51   ;;  %460 = vperm.xlu0 %2121, %v354_v52   ;;  %v1473_v51 = vld [vmem:[%s3105_s5 + $0x30] sm:$0xff]  ;;  %v1472_v52 = vld [vmem:[%s3105_s5 + $0x28] sm:$0xff] }
  0x49   : > { %2020 = vmatpush3.bf16.xpose.msra.mxu0 %v664_v53  ;;  %v1475_v53 = vld [vmem:[%s3105_s5 + $0x40] sm:$0xff] }
  0x4a   : > { %2079 = vmatprep.subr.msk.bf16.mxu0 %vm608_vm0, %v297_v54  ;;  %v1474_v54 = vld [vmem:[%s3105_s5 + $0x38] sm:$0xff] }
  0x4b   : > { %385 = vperm.xlu1 %2122, %v339_v55   ;;  %380 = vperm.xlu0 %2121, %v338_v56   ;;  %v1477_v55 = vld [vmem:[%s3105_s5 + $0x50] sm:$0xff]  ;;  %v1476_v56 = vld [vmem:[%s3105_s5 + $0x48] sm:$0xff] }
  0x4f   : > { %455 = vperm.xlu1 %2122, %v353_v57   ;;  %450 = vperm.xlu0 %2121, %v352_v58   ;;  %v1479_v57 = vld [vmem:[%s3105_s5 + $0x60] sm:$0xff]  ;;  %v1478_v58 = vld [vmem:[%s3105_s5 + $0x58] sm:$0xff] }
  0x51   : > { %2022 = vmatpush3.bf16.xpose.msra.mxu0 %v661_v61  ;;  %v1483_v61 = vld [vmem:[%s3105_s5 + $0x80] sm:$0xff] }
  0x52   : > { %2080 = vmatprep.subr.msk.bf16.mxu0 %vm608_vm0, %v296_v63  ;;  %v1485_v63 = vld [vmem:[%s3105_s5 + $0x90] sm:$0xff] }
  0x53   : > { %375 = vperm.xlu1 %2122, %v337_v62   ;;  %370 = vperm.xlu0 %2121, %v336_v0   ;;  %v1482_v62 = vld [vmem:[%s3105_s5 + $0x78] sm:$0xff]  ;;  %v1484_v0 = vld [vmem:[%s3105_s5 + $0x88] sm:$0xff] }
  0x57   : > { %961 = vperm.xlu1 %2122, %v923_v1   ;;  %956 = vperm.xlu0 %2121, %v922_v2   ;;  %v1487_v1 = vld [vmem:[%s3105_s5 + $0xa0] sm:$0xff]  ;;  %v1486_v2 = vld [vmem:[%s3105_s5 + $0x98] sm:$0xff] }
  0x59   : > { %2024 = vmatpush3.bf16.xpose.msra.mxu0 %v658_v3  ;;  %v1489_v3 = vld [vmem:[%s3105_s5 + $0xb0] sm:$0xff] }
  0x5b   : > { %971 = vperm.xlu1 %2122, %v925_v4   ;;  %966 = vperm.xlu0 %2121, %v924_v5   ;;  %v1488_v4 = vld [vmem:[%s3105_s5 + $0xa8] sm:$0xff]  ;;  %v1491_v5 = vld [vmem:[%s3105_s5 + $0xc0] sm:$0xff] }
  0x5f   : > { %981 = vperm.xlu1 %2122, %v927_v6   ;;  %976 = vperm.xlu0 %2121, %v926_v7   ;;  %v1490_v6 = vld [vmem:[%s3105_s5 + $0xb8] sm:$0xff]  ;;  %v1493_v7 = vld [vmem:[%s3105_s5 + $0xd0] sm:$0xff] }
  0x60   : > { %2026 = vmatmul.mubr.msk.bf16.vlgmr.msra.gmra.mxu0 %vm608_vm0, %v2124_v8  ;;  %v1492_v8 = vld [vmem:[%s3105_s5 + $0xc8] sm:$0xff] }
  0x61   : > { %2029 = vmatprep.mubr.msk.bf16.mxu0 %vm608_vm0, %v2125_v9  ;;  %v1494_v9 = vld [vmem:[%s3105_s5 + $0xd8] sm:$0xff] }
  0x63   : > { %991 = vperm.xlu1 %2122, %v929_v10   ;;  %986 = vperm.xlu0 %2121, %v928_v11   ;;  %v951_v10 = vld [vmem:[%s3104_s4 + $0xe8] sm:$0xff]  ;;  %v1495_v11 = vld [vmem:[%s3105_s5 + $0xe0] sm:$0xff] }
  0x67   : > { %1001 = vperm.xlu1 %2122, %v931_v12   ;;  %996 = vperm.xlu0 %2121, %v930_v13   ;;  %v952_v12 = vld [vmem:[%s3104_s4 + $0xf0] sm:$0xff] }
  0x68   : > { %2030 = vmatmul.mubr.msk.bf16.gmra.mxu0 %vm608_vm0, %v2126_v14 }
  0x69   : > { %2033 = vmatprep.mubr.msk.bf16.mxu0 %vm608_vm0, %v2127_v15  ;;  %v1496_v15 = vld [vmem:[%s3105_s5 + $0xe8] sm:$0xff] }
  0x6b   : > { %1011 = vperm.xlu1 %2122, %v933_v16   ;;  %1006 = vperm.xlu0 %2121, %v932_v17   ;;  %v953_v16 = vld [vmem:[%s3104_s4 + $0xf8] sm:$0xff] }
  0x6f   : > { %1021 = vperm.xlu1 %2122, %v935_v18   ;;  %1016 = vperm.xlu0 %2121, %v934_v19   ;;  %v1498_v18 = vld [vmem:[%s3105_s5 + $0xf8] sm:$0xff]  ;;  %v1497_v19 = vld [vmem:[%s3105_s5 + $0xf0] sm:$0xff] }
  0x70   : > { %2034 = vmatmul.mubr.msk.bf16.gmra.mxu0 %vm608_vm0, %v2128_v20 }
  0x71   : > { %2037 = vmatprep.mubr.msk.bf16.mxu0 %vm608_vm0, %v2129_v21 }
  0x73   : > { %1031 = vperm.xlu1 %2122, %v937_v22   ;;  %1026 = vperm.xlu0 %2121, %v936_v23  }
  0x77   : > { %1041 = vperm.xlu1 %2122, %v939_v24   ;;  %1036 = vperm.xlu0 %2121, %v938_v25  }
  0x78   : > { %2038 = vmatmul.mubr.msk.bf16.gmra.mxu0 %vm608_vm0, %v2130_v26 }
  0x79   : > { %2041 = vmatprep.mubr.msk.bf16.mxu0 %vm608_vm0, %v2131_v27 }
  0x7b   : > { %1051 = vperm.xlu1 %2122, %v941_v28   ;;  %1046 = vperm.xlu0 %2121, %v940_v29  }
  0x7f   : > { %1061 = vperm.xlu1 %2122, %v943_v30   ;;  %1056 = vperm.xlu0 %2121, %v942_v31  }
  0x80   : > { %2042 = vmatmul.mubr.msk.bf16.gmra.mxu0 %vm608_vm0, %v2132_v32 }
  0x81   : > { %2045 = vmatprep.mubr.msk.bf16.mxu0 %vm608_vm0, %v2133_v33 }
  0x83   : > { %1071 = vperm.xlu1 %2122, %v945_v34   ;;  %1066 = vperm.xlu0 %2121, %v944_v35  }
  0x87   : > { %1081 = vperm.xlu1 %2122, %v947_v36   ;;  %1076 = vperm.xlu0 %2121, %v946_v37   ;;  %v2141_v36 = vld [vmem:[%s3103_s3 + $0x4] ss:$8 sps:$4 sm:$0xff]  }
  0x88   : > { %2046 = vmatmul.mubr.msk.bf16.gmra.mxu0 %vm608_vm0, %v2134_v38  ;;  %v2144_v37 = vld [vmem:[%s3103_s3 + $0x24] ss:$8 sps:$4 sm:$0xff]  }
  0x89   : > { %2049 = vmatprep.mubr.msk.bf16.mxu0 %vm608_vm0, %v2135_v39  ;;  %1322 = vmatprep.mubr.bf16.mxu1 %v2144_v37 }
  0x8b   : > { %1091 = vperm.xlu1 %2122, %v949_v40   ;;  %1086 = vperm.xlu0 %2121, %v948_v41  }
  0x8f   : > { %1501 = vperm.xlu1 %2122, %v1467_v42   ;;  %1096 = vperm.xlu0 %2121, %v950_v43  }
  0x90   : > { %2050 = vmatmul.mubr.msk.bf16.gmra.mxu0 %vm608_vm0, %v2136_v44 }
  0x91   : > { %2053 = vmatprep.mubr.msk.bf16.mxu0 %vm608_vm0, %v2137_v45 }
  0x92   : > { %v2720_v13 = vpop.permute.xlu0 %520  ;;  %v2722_v14 = vpop.permute.xlu1 %440 }
  0x93   : > { %1511 = vperm.xlu1 %2122, %v1469_v46   ;;  %1506 = vperm.xlu0 %2121, %v1468_v47  }
  0x96   : > { %v2730_v17 = vpop.permute.xlu0 %525  ;;  %v2738_v20 = vpop.permute.xlu1 %445 }
  0x97   : > { %1521 = vperm.xlu1 %2122, %v1471_v48   ;;  %1516 = vperm.xlu0 %2121, %v1470_v49  }
  0x98   : > { %2054 = vmatmul.mubr.msk.bf16.gmra.mxu0 %vm608_vm0, %v2138_v50 }
  0x99   : > { %1306 = vmatprep.mubr.bf16.mxu0 %v2141_v36 }
  0x9a   : > { %v2740_v21 = vpop.permute.xlu0 %510  ;;  %v2742_v22 = vpop.permute.xlu1 %515 }
  0x9b   : > { %1531 = vperm.xlu1 %2122, %v1473_v51   ;;  %1526 = vperm.xlu0 %2121, %v1472_v52  }
  0x9e   : > { %v2744_v23 = vpop.permute.xlu0 %430  ;;  %v2746_v24 = vpop.permute.xlu1 %435 }
  0x9f   : > { %1541 = vperm.xlu1 %2122, %v1475_v53   ;;  %1536 = vperm.xlu0 %2121, %v1474_v54  }
  0xa2   : > { %v2748_v25 = vpop.permute.xlu0 %500  ;;  %v2750_v26 = vpop.permute.xlu1 %505 }
  0xa3   : > { %1551 = vperm.xlu1 %2122, %v1477_v55   ;;  %1546 = vperm.xlu0 %2121, %v1476_v56  }
  0xa6   : > { %v2752_v27 = vpop.permute.xlu0 %420  ;;  %v2754_v28 = vpop.permute.xlu1 %425 }
  0xa7   : > { %1561 = vperm.xlu1 %2122, %v1479_v57   ;;  %1556 = vperm.xlu0 %2121, %v1478_v58  }
  0xaa   : > { %v2756_v29 = vpop.permute.xlu0 %490  ;;  %v2758_v30 = vpop.permute.xlu1 %495 }
  0xab   : > { %1571 = vperm.xlu1 %2122, %v1481_v59   ;;  %1566 = vperm.xlu0 %2121, %v1480_v60  }
  0xae   : > { %v2760_v31 = vpop.permute.xlu0 %410  ;;  %v2762_v32 = vpop.permute.xlu1 %415 }
  0xaf   : > { %1581 = vperm.xlu1 %2122, %v1483_v61   ;;  %1576 = vperm.xlu0 %2121, %v1482_v62  }
  0xb2   : > { %v2764_v33 = vpop.permute.xlu0 %480  ;;  %v2766_v34 = vpop.permute.xlu1 %485 }
  0xb3   : > { %1591 = vperm.xlu1 %2122, %v1485_v63   ;;  %1586 = vperm.xlu0 %2121, %v1484_v0  }
  0xb6   : > { %v401_v35 = vpop.permute.xlu0 %400  ;;  %v406_v38 = vpop.permute.xlu1 %405 }
  0xb7   : > { %1601 = vperm.xlu1 %2122, %v1487_v1   ;;  %1596 = vperm.xlu0 %2121, %v1486_v2  }
  0xba   : > { %v2774_v39 = vpop.permute.xlu0 %470  ;;  %v2776_v40 = vpop.permute.xlu1 %475 }
  0xbb   : > { %1611 = vperm.xlu1 %2122, %v1489_v3   ;;  %1606 = vperm.xlu0 %2121, %v1488_v4  }
  0xbe   : > { %v391_v41 = vpop.permute.xlu0 %390  ;;  %v396_v42 = vpop.permute.xlu1 %395 }
  0xbf   : > { %1621 = vperm.xlu1 %2122, %v1491_v5   ;;  %1616 = vperm.xlu0 %2121, %v1490_v6  }
  0xc2   : > { %v2778_v43 = vpop.permute.xlu0 %460  ;;  %v2780_v44 = vpop.permute.xlu1 %465 }
  0xc3   : > { %1631 = vperm.xlu1 %2122, %v1493_v7   ;;  %1626 = vperm.xlu0 %2121, %v1492_v8  }
  0xc6   : > { %v381_v45 = vpop.permute.xlu0 %380  ;;  %v386_v46 = vpop.permute.xlu1 %385 }
  0xc7   : > { %1636 = vperm.xlu1 %2122, %v1494_v9   ;;  %1101 = vperm.xlu0 %2121, %v951_v10  }
  0xca   : > { %v2782_v47 = vpop.permute.xlu0 %450  ;;  %v2784_v48 = vpop.permute.xlu1 %455 }
  0xcb   : > { %1641 = vperm.xlu1 %2122, %v1495_v11   ;;  %1106 = vperm.xlu0 %2121, %v952_v12  }
  0xce   : > { %v371_v52 = vpop.permute.xlu0 %370  ;;  %v376_v56 = vpop.permute.xlu1 %375 }
  0xcf   : > { %1646 = vperm.xlu1 %2122, %v1496_v15   ;;  %1111 = vperm.xlu0 %2121, %v953_v16  }
  0xd3   : > { %1656 = vperm.xlu1 %2122, %v1498_v18   ;;  %1651 = vperm.xlu0 %2121, %v1497_v19  }
 0x120   : > { %v2027_v49 = vpop.f32.mrf.mxu0 }
 0x121   : > { %v724_v51 = vadd.f32 %v2027_v49, %v381_v45 }
 0x122   : > { %v715_v50 = vpop.f32.mrf.mxu0 }
 0x123   : > { %v716_v54 = vadd.f32 %v715_v50, %v371_v52  ;;  %v844_v58 = vmax.f32 %v724_v51, 0.0 }
 0x124   : > { %v2028_v53 = vpop.f32.mrf.mxu0 }
 0x125   : > { %v727_v55 = vadd.f32 %v2028_v53, %v386_v46  ;;  %v842_v62 = vmax.f32 %v716_v54, 0.0 }
 0x126   : > { %v718_v57 = vpop.f32.mrf.mxu0 }
 0x127   : > { %v845_v59 = vmax.f32 %v727_v55, 0.0  ;;  %v719_v60 = vadd.f32 %v718_v57, %v376_v56 }
 0x128   : > { %v2031_v61 = vpop.f32.mrf.mxu0 }
 0x129   : > { %v2786_v63 = vpack.c.bf16 %v845_v59, %v844_v58  ;;  %v843_v0 = vmax.f32 %v719_v60, 0.0  ;;  %v740_v3 = vadd.f32 %v2031_v61, %v401_v35 }
 0x12a   : > { %v731_v1 = vpop.f32.mrf.mxu0 }
 0x12b   : > { %v2788_v2 = vpack.c.bf16 %v843_v0, %v842_v62  ;;  %v732_v5 = vadd.f32 %v731_v1, %v391_v41  ;;  %v848_v8 = vmax.f32 %v740_v3, 0.0 }
 0x12c   : > { %v2032_v4 = vpop.f32.mrf.mxu0 }
 0x12d   : > { %v743_v6 = vadd.f32 %v2032_v4, %v406_v38  ;;  %v846_v12 = vmax.f32 %v732_v5, 0.0 }
 0x12e   : > { %v734_v7 = vpop.f32.mrf.mxu0 }
 0x12f   : > { %v849_v9 = vmax.f32 %v743_v6, 0.0  ;;  %v735_v10 = vadd.f32 %v734_v7, %v396_v42 }
 0x130   : > { %v2035_v11 = vpop.f32.mrf.mxu0 }
 0x131   : > { %v2790_v15 = vpack.c.bf16 %v849_v9, %v848_v8  ;;  %v847_v16 = vmax.f32 %v735_v10, 0.0 }
 0x132   : > { %v2792_v18 = vpop.f32.mrf.mxu0 }
 0x133   : > { %v2794_v19 = vpack.c.bf16 %v847_v16, %v846_v12 }
 0x134   : > { %v2036_v36 = vpop.f32.mrf.mxu0 }
 0x136   : > { %v750_v37 = vpop.f32.mrf.mxu0 }
 0x138   : > { %v2039_v45 = vpop.f32.mrf.mxu0 }
 0x139   : > { %v772_v0 = vadd.f32 %v2039_v45, %v2722_v14 }
 0x13a   : > { %v763_v35 = vpop.f32.mrf.mxu0 }
 0x13b   : > { %v856_v12 = vmax.f32 %v772_v0, 0.0 }
 0x13c   : > { %v2040_v46 = vpop.f32.mrf.mxu0 }
 0x13d   : > { %v775_v60 = vadd.f32 %v2040_v46, %v2738_v20 }
 0x13e   : > { %v766_v41 = vpop.f32.mrf.mxu0 }
 0x13f   : > { %v857_v5 = vmax.f32 %v775_v60, 0.0  ;;  %v767_v6 = vadd.f32 %v766_v41, %v2746_v24 }
 0x140   : > { %v2796_v38 = vpop.f32.mrf.mxu0 }
 0x141   : > { %v913_v46 = vpack.c.bf16 %v857_v5, %v856_v12  ;;  %v2154_v5 = vld [vmem:[%s3103_s3 + $0x54] ss:$8 sps:$4 sm:$0xff]   ;;  %v2165_v12 = vld [vmem:[%s3103_s3 + $0x80] ss:$8 sps:$4 sm:$0xff]  }
 0x142   : > { %v2798_v49 = vpop.f32.mrf.mxu0 }
 0x144   : > { %v2800_v42 = vpop.f32.mrf.mxu0 }
 0x146   : > { %v2802_v50 = vpop.f32.mrf.mxu0 }
 0x148   : > { %v2047_v51 = vpop.f32.mrf.mxu0 }
 0x14a   : > { %v2804_v52 = vpop.f32.mrf.mxu0 }
 0x14c   : > { %v2048_v53 = vpop.f32.mrf.mxu0 }
 0x14e   : > { %v798_v54 = vpop.f32.mrf.mxu0 }
 0x150   : > { %v2051_v55 = vpop.f32.mrf.mxu0 }
 0x151   : > { %v820_v14 = vadd.f32 %v2051_v55, %v2748_v25  ;;  %v807_v55 = vadd.f32 %v2048_v53, %v2766_v34 }
 0x152   : > { %v811_v56 = vpop.f32.mrf.mxu0 }
 0x153   : > { %v812_v25 = vadd.f32 %v811_v56, %v2756_v29 }
 0x154   : > { %v2052_v57 = vpop.f32.mrf.mxu0 }
 0x155   : > { %v823_v8 = vadd.f32 %v2052_v57, %v2750_v26 }
 0x156   : > { %v814_v58 = vpop.f32.mrf.mxu0 }
 0x157   : > { %v869_v24 = vmax.f32 %v823_v8, 0.0  ;;  %v815_v41 = vadd.f32 %v814_v58, %v2758_v30  ;;  %v2159_v8 = vld [vmem:[%s3103_s3 + $0x60] ss:$8 sps:$4 sm:$0xff]  }
 0x158   : > { %v2055_v59 = vpop.f32.mrf.mxu0 }
 0x159   : > { %v836_v62 = vadd.f32 %v2055_v59, %v2720_v13  ;;  %v764_v13 = vadd.f32 %v763_v35, %v2744_v23  ;;  %v855_v59 = vmax.f32 %v767_v6, 0.0  ;;  %v868_v23 = vmax.f32 %v820_v14, 0.0  ;;  %v2156_v6 = vld [vmem:[%s3103_s3 + $0x50] ss:$8 sps:$4 sm:$0xff]  }
 0x15a   : > { %v827_v61 = vpop.f32.mrf.mxu0  ;;  %v867_v58 = vmax.f32 %v815_v41, 0.0  ;;  %v2168_v14 = vld [vmem:[%s3103_s3 + $0x90] ss:$8 sps:$4 sm:$0xff]  }
 0x15b   : > { %v828_v3 = vadd.f32 %v827_v61, %v2740_v21  ;;  %v872_v9 = vmax.f32 %v836_v62, 0.0  ;;  %v854_v57 = vmax.f32 %v764_v13, 0.0  ;;  %v919_v30 = vpack.c.bf16 %v869_v24, %v868_v23  ;;  %v2166_v13 = vld [vmem:[%s3103_s3 + $0x94] ss:$8 sps:$4 sm:$0xff]   ;;  %v2180_v41 = vld [vmem:[%s3103_s3 + $0xd0] ss:$8 sps:$4 sm:$0xff]  }
 0x15c   : > { %v2056_v1 = vpop.f32.mrf.mxu0  ;;  %v866_v61 = vmax.f32 %v812_v25, 0.0  ;;  %v865_v62 = vmax.f32 %v807_v55, 0.0  ;;  %v2178_v24 = vld [vmem:[%s3103_s3 + $0xd4] ss:$8 sps:$4 sm:$0xff]   ;;  %v2186_v23 = vld [vmem:[%s3103_s3 + $0xf0] ss:$8 sps:$4 sm:$0xff]   ;;  %v2934_v25 = vpop.permute.xlu0 %956 }
 0x15d   : > { %v839_v4 = vadd.f32 %v2056_v1, %v2730_v17  ;;  %v870_v16 = vmax.f32 %v828_v3, 0.0  ;;  %v759_v17 = vadd.f32 %v2036_v36, %v2754_v28  ;;  %v751_v28 = vadd.f32 %v750_v37, %v2762_v32 }
 0x15e   : > { %v830_v7 = vpop.f32.mrf.mxu0  ;;  %v912_v36 = vpack.c.bf16 %v855_v59, %v854_v57  ;;  %v799_v32 = vadd.f32 %v798_v54, %v2776_v40  ;;  %v918_v37 = vpack.c.bf16 %v867_v58, %v866_v61  ;;  %v788_v40 = vadd.f32 %v2796_v38, %v2778_v43  ;;  %v2177_v59 = vld [vmem:[%s3103_s3 + $0xc0] ss:$8 sps:$4 sm:$0xff]   ;;  %v2184_v57 = vld [vmem:[%s3103_s3 + $0xf4] ss:$8 sps:$4 sm:$0xff]  }
 0x15f   : > { %v873_v10 = vmax.f32 %v839_v4, 0.0  ;;  %v831_v20 = vadd.f32 %v830_v7, %v2742_v22  ;;  %v756_v22 = vadd.f32 %v2035_v11, %v2752_v27  ;;  %v853_v35 = vmax.f32 %v759_v17, 0.0  ;;  %v2153_v4 = vld [vmem:[%s3103_s3 + $0x40] ss:$8 sps:$4 sm:$0xff]   ;;  %v2157_v7 = vld [vmem:[%s3103_s3 + $0x64] ss:$8 sps:$4 sm:$0xff]  }
 0x160   : > { %v748_v27 = vadd.f32 %v2792_v18, %v2760_v31  ;;  %v804_v11 = vadd.f32 %v2047_v51, %v2764_v33  ;;  %v851_v56 = vmax.f32 %v751_v28, 0.0  ;;  %v796_v31 = vadd.f32 %v2804_v52, %v2774_v39  ;;  %v2174_v17 = vld [vmem:[%s3103_s3 + $0xb0] ss:$8 sps:$4 sm:$0xff]   ;;  %v2936_v28 = vpop.permute.xlu0 %966 }
 0x161   : > { %v921_v45 = vpack.c.bf16 %v873_v10, %v872_v9  ;;  %v871_v21 = vmax.f32 %v831_v20, 0.0  ;;  %v852_v60 = vmax.f32 %v756_v22, 0.0  ;;  %v791_v33 = vadd.f32 %v2800_v42, %v2780_v44  ;;  %v2160_v9 = vld [vmem:[%s3103_s3 + $0x74] ss:$8 sps:$4 sm:$0xff]   ;;  %v2162_v10 = vld [vmem:[%s3103_s3 + $0x70] ss:$8 sps:$4 sm:$0xff]  }
 0x162   : > { %v850_v34 = vmax.f32 %v748_v27, 0.0  ;;  %v864_v53 = vmax.f32 %v804_v11, 0.0  ;;  %v863_v0 = vmax.f32 %v799_v32, 0.0  ;;  %v862_v54 = vmax.f32 %v796_v31, 0.0  ;;  %v2163_v20 = vld [vmem:[%s3103_s3 + $0x84] ss:$8 sps:$4 sm:$0xff]  }
 0x163   : > { %v920_v26 = vpack.c.bf16 %v871_v21, %v870_v16  ;;  %1897 = vmatprep.subr.bf16.mxu0 %v921_v45  ;;  %2057 = vmatprep.subr.bf16.mxu1 %v921_v45  ;;  %v911_v29 = vpack.c.bf16 %v853_v35, %v852_v60  ;;  %v861_v1 = vmax.f32 %v791_v33, 0.0  ;;  %v783_v39 = vadd.f32 %v2802_v50, %v2784_v48  ;;  %v2151_v50 = vld [vmem:[%s3103_s3 + $0x44] ss:$8 sps:$4 sm:$0xff]   ;;  %v2171_v45 = vld [vmem:[%s3103_s3 + $0xa0] ss:$8 sps:$4 sm:$0xff]   ;;  %v962_v35 = vpop.permute.xlu1 %961 }
 0x164   : > { %1898 = vmatpush3.bf16.msra.mxu0 %v913_v46  ;;  %2065 = vmatpush3.bf16.msra.mxu1 %v913_v46  ;;  %v910_v18 = vpack.c.bf16 %v851_v56, %v850_v34  ;;  %v917_v51 = vpack.c.bf16 %v865_v62, %v864_v53  ;;  %v916_v52 = vpack.c.bf16 %v863_v0, %v862_v54  ;;  %v860_v44 = vmax.f32 %v788_v40, 0.0  ;;  %v2169_v16 = vld [vmem:[%s3103_s3 + $0xa4] ss:$8 sps:$4 sm:$0xff]   ;;  %v2172_v21 = vld [vmem:[%s3103_s3 + $0xb4] ss:$8 sps:$4 sm:$0xff]   ;;  %v2940_v55 = vpop.permute.xlu0 %976 }
 0x165   : > { %1899 = vmatprep.subr.bf16.mxu0 %v920_v26  ;;  %2058 = vmatprep.subr.bf16.mxu1 %v920_v26  ;;  %v780_v42 = vadd.f32 %v2798_v49, %v2782_v47  ;;  %v859_v43 = vmax.f32 %v783_v39, 0.0  ;;  %v2139_v47 = vld [vmem:[%s3103_s3] ss:$8 sps:$4 sm:$0xff]   ;;  %v2149_v49 = vld [vmem:[%s3103_s3 + $0x10] ss:$8 sps:$4 sm:$0xff]  }
 0x166   : > { %v915_v3 = vpack.c.bf16 %v861_v1, %v860_v44  ;;  %v2175_v46 = vld [vmem:[%s3103_s3 + $0xc4] ss:$8 sps:$4 sm:$0xff]   ;;  %v2183_v22 = vld [vmem:[%s3103_s3 + $0xe0] ss:$8 sps:$4 sm:$0xff]  }
 0x167   : > { %v858_v38 = vmax.f32 %v780_v42, 0.0  ;;  %v2181_v26 = vld [vmem:[%s3103_s3 + $0xe4] ss:$8 sps:$4 sm:$0xff]  }
 0x168   : > { %1900 = vmatpush3.bf16.msra.mxu0 %v912_v36  ;;  %2066 = vmatpush3.bf16.msra.mxu1 %v912_v36  ;;  %v2938_v36 = vpop.permute.xlu1 %971  ;;  %v2944_v58 = vpop.permute.xlu0 %986 }
 0x169   : > { %1901 = vmatprep.subr.bf16.mxu0 %v919_v30  ;;  %2059 = vmatprep.subr.bf16.mxu1 %v919_v30  ;;  %v914_v48 = vpack.c.bf16 %v859_v43, %v858_v38 }
 0x16c   : > { %1902 = vmatpush3.bf16.msra.mxu0 %v911_v29  ;;  %2067 = vmatpush3.bf16.msra.mxu1 %v911_v29  ;;  %v2942_v30 = vpop.permute.xlu1 %981  ;;  %v2948_v27 = vpop.permute.xlu0 %996 }
 0x16d   : > { %1903 = vmatprep.subr.bf16.mxu0 %v918_v37  ;;  %2060 = vmatprep.subr.bf16.mxu1 %v918_v37 }
 0x170   : > { %1904 = vmatpush3.bf16.msra.mxu0 %v910_v18  ;;  %2068 = vmatpush3.bf16.msra.mxu1 %v910_v18  ;;  %v2946_v60 = vpop.permute.xlu1 %991  ;;  %v2952_v61 = vpop.permute.xlu0 %1006 }
 0x171   : > { %1905 = vmatprep.subr.bf16.mxu0 %v917_v51  ;;  %2061 = vmatprep.subr.bf16.mxu1 %v917_v51 }
 0x174   : > { %1906 = vmatpush3.bf16.msra.mxu0 %v2790_v15  ;;  %2069 = vmatpush3.bf16.msra.mxu1 %v2790_v15  ;;  %v2142_v15 = vld [vmem:[%s3103_s3 + $0x20] ss:$8 sps:$4 sm:$0xff]   ;;  %v2950_v11 = vpop.permute.xlu1 %1001  ;;  %v2956_v56 = vpop.permute.xlu0 %1016 }
 0x175   : > { %1907 = vmatprep.subr.bf16.mxu0 %v916_v52  ;;  %2062 = vmatprep.subr.bf16.mxu1 %v916_v52 }
 0x178   : > { %1908 = vmatpush3.bf16.msra.mxu0 %v2794_v19  ;;  %2070 = vmatpush3.bf16.msra.mxu1 %v2794_v19  ;;  %v2145_v19 = vld [vmem:[%s3103_s3 + $0x14] ss:$8 sps:$4 sm:$0xff]   ;;  %v2954_v29 = vpop.permute.xlu1 %1011  ;;  %v2960_v32 = vpop.permute.xlu0 %1026 }
 0x179   : > { %1909 = vmatprep.subr.bf16.mxu0 %v915_v3  ;;  %2063 = vmatprep.subr.bf16.mxu1 %v915_v3 }
 0x17c   : > { %1910 = vmatpush3.bf16.msra.mxu0 %v2786_v63  ;;  %2071 = vmatpush3.bf16.msra.mxu1 %v2786_v63  ;;  %v2147_v63 = vld [vmem:[%s3103_s3 + $0x34] ss:$8 sps:$4 sm:$0xff]   ;;  %v2958_v62 = vpop.permute.xlu1 %1021  ;;  %v2964_v34 = vpop.permute.xlu0 %1036 }
 0x17d   : > { %1911 = vmatprep.subr.bf16.mxu0 %v914_v48  ;;  %2064 = vmatprep.subr.bf16.mxu1 %v914_v48 }
 0x180   : > { %1912 = vmatpush3.bf16.msra.mxu0 %v2788_v2  ;;  %2072 = vmatpush3.bf16.msra.mxu1 %v2788_v2  ;;  %v2150_v2 = vld [vmem:[%s3103_s3 + $0x30] ss:$8 sps:$4 sm:$0xff]   ;;  %v2962_v37 = vpop.permute.xlu1 %1031  ;;  %v2968_v31 = vpop.permute.xlu0 %1046 }
 0x183   : > { %1307 = vmatmul.mubr.bf16.vlgmr.msra.gmra.mxu0 %v2139_v47  ;;  %1323 = vmatmul.mubr.bf16.vlgmr.msra.gmra.mxu1 %v2142_v15 }
 0x184   : > { %1314 = vmatprep.mubr.bf16.mxu0 %v2145_v19  ;;  %1330 = vmatprep.mubr.bf16.mxu1 %v2147_v63  ;;  %v2966_v53 = vpop.permute.xlu1 %1041  ;;  %v2972_v33 = vpop.permute.xlu0 %1056 }
 0x185   : > { %3110 = vst [vmem:[#allocation6_spill] sm:$0xff] %v2972_v33 }
 0x188   : > { %v2970_v18 = vpop.permute.xlu1 %1051  ;;  %v2976_v0 = vpop.permute.xlu0 %1066 }
 0x189   : > { %3112 = vst [vmem:[#allocation8_spill] sm:$0xff] %v2976_v0 }
 0x18b   : > { %1315 = vmatmul.mubr.bf16.gmra.mxu0 %v2149_v49  ;;  %1331 = vmatmul.mubr.bf16.gmra.mxu1 %v2150_v2 }
 0x18c   : > { %1338 = vmatprep.mubr.bf16.mxu1 %v2151_v50  ;;  %v2974_v51 = vpop.permute.xlu1 %1061  ;;  %v2980_v54 = vpop.permute.xlu0 %1076 }
 0x18d   : > { %3111 = vst [vmem:[#allocation7_spill] sm:$0xff] %v2974_v51  ;;  %3114 = vst [vmem:[#allocation10_spill] sm:$0xff] %v2980_v54 }
 0x190   : > { %v2978_v40 = vpop.permute.xlu1 %1071  ;;  %v2984_v3 = vpop.permute.xlu0 %1086 }
 0x191   : > { %3113 = vst [vmem:[#allocation9_spill] sm:$0xff] %v2978_v40  ;;  %3116 = vst [vmem:[#allocation12_spill] sm:$0xff] %v2984_v3 }
 0x193   : > { %1339 = vmatmul.mubr.bf16.gmra.mxu1 %v2153_v4 }
 0x194   : > { %1346 = vmatprep.mubr.bf16.mxu1 %v2154_v5  ;;  %v2982_v52 = vpop.permute.xlu1 %1081  ;;  %v2988_v19 = vpop.permute.xlu0 %1096 }
 0x195   : > { %3115 = vst [vmem:[#allocation11_spill] sm:$0xff] %v2982_v52  ;;  %3118 = vst [vmem:[#allocation14_spill] sm:$0xff] %v2988_v19 }
 0x198   : > { %v2986_v47 = vpop.permute.xlu1 %1091 }
 0x199   : > { %3117 = vst [vmem:[#allocation13_spill] sm:$0xff] %v2986_v47 }
 0x19b   : > { %1347 = vmatmul.mubr.bf16.gmra.mxu1 %v2156_v6  ;;  %v1507_v6 = vpop.permute.xlu0 %1506 }
 0x19c   : > { %1354 = vmatprep.mubr.bf16.mxu1 %v2157_v7  ;;  %v1502_v50 = vpop.permute.xlu1 %1501 }
 0x1a3   : > { %1355 = vmatmul.mubr.bf16.gmra.mxu1 %v2159_v8 }
 0x1a4   : > { %1362 = vmatprep.mubr.bf16.mxu1 %v2160_v9 }
 0x1ab   : > { %1363 = vmatmul.mubr.bf16.gmra.mxu1 %v2162_v10  ;;  %v1512_v10 = vpop.permute.xlu1 %1511 }
 0x1ac   : > { %1370 = vmatprep.mubr.bf16.mxu1 %v2163_v20 }
 0x1b3   : > { %1371 = vmatmul.mubr.bf16.gmra.mxu1 %v2165_v12  ;;  %v1517_v12 = vpop.permute.xlu0 %1516 }
 0x1b4   : > { %1378 = vmatprep.mubr.bf16.mxu1 %v2166_v13 }
 0x1bb   : > { %1379 = vmatmul.mubr.bf16.gmra.mxu1 %v2168_v14 }
 0x1bc   : > { %1386 = vmatprep.mubr.bf16.mxu1 %v2169_v16 }
 0x1c3   : > { %1387 = vmatmul.mubr.bf16.gmra.mxu1 %v2171_v45  ;;  %v1522_v45 = vpop.permute.xlu1 %1521 }
 0x1c4   : > { %1394 = vmatprep.mubr.bf16.mxu1 %v2172_v21 }
 0x1c7   : > { %v1532_v3 = vpop.permute.xlu1 %1531 }
 0x1cb   : > { %1395 = vmatmul.mubr.bf16.gmra.mxu1 %v2174_v17 }
 0x1cc   : > { %1402 = vmatprep.mubr.bf16.mxu1 %v2175_v46 }
 0x1d3   : > { %1403 = vmatmul.mubr.bf16.gmra.mxu1 %v2177_v59 }
 0x1d4   : > { %1410 = vmatprep.mubr.bf16.mxu1 %v2178_v24 }
 0x1db   : > { %1411 = vmatmul.mubr.bf16.gmra.mxu1 %v2180_v41  ;;  %v1527_v41 = vpop.permute.xlu0 %1526 }
 0x1dc   : > { %1418 = vmatprep.mubr.bf16.mxu1 %v2181_v26 }
 0x1df   : > { %v1537_v54 = vpop.permute.xlu0 %1536 }
 0x1e3   : > { %1419 = vmatmul.mubr.bf16.gmra.mxu1 %v2183_v22 }
 0x1e4   : > { %1426 = vmatprep.mubr.bf16.mxu1 %v2184_v57 }
 0x1eb   : > { %1427 = vmatmul.mubr.bf16.gmra.mxu1 %v2186_v23 }
 0x243   : > { %v1913_v1 = vpop.f32.mrf.mxu0  ;;  %v1925_v39 = vpop.f32.mrf.mxu1 }
 0x245   : > { %v1914_v44 = vpop.f32.mrf.mxu0  ;;  %v1926_v42 = vpop.f32.mrf.mxu1 }
 0x246   : > { %v1915_v59 = vadd.f32 %v1914_v44, %v1913_v1 }
 0x247   : > { %v1928_v43 = vpop.f32.mrf.mxu1  ;;  %v1916_v38 = vpop.f32.mrf.mxu0 }
 0x248   : > { %v1309_v19 = vadd.f32 %v1915_v59, %v2934_v25 }
 0x249   : > { %v1929_v48 = vpop.f32.mrf.mxu1  ;;  %v1917_v63 = vpop.f32.mrf.mxu0 }
 0x24a   : > { %v1918_v21 = vadd.f32 %v1917_v63, %v1916_v38  ;;  %v1435_v44 = vmax.f32 %v1309_v19, 0.0 }
 0x24b   : > { %v1931_v15 = vpop.f32.mrf.mxu1  ;;  %v1919_v4 = vpop.f32.mrf.mxu0 }
 0x24c   : > { %v1312_v22 = vadd.f32 %v1918_v21, %v962_v35  ;;  %v1659_v59 = vmul.f32 %v1502_v50, %v1435_v44 }
 0x24d   : > { %v1932_v49 = vpop.f32.mrf.mxu1  ;;  %v1920_v8 = vpop.f32.mrf.mxu0 }
 0x24e   : > { %v1921_v24 = vadd.f32 %v1920_v8, %v1919_v4  ;;  %v1436_v38 = vmax.f32 %v1312_v22, 0.0  ;;  %v1927_v4 = vadd.f32 %v1926_v42, %v1925_v39  ;;  %v1547_v22 = vpop.permute.xlu0 %1546 }
 0x24f   : > { %v1934_v2 = vpop.f32.mrf.mxu1  ;;  %v1922_v13 = vpop.f32.mrf.mxu0 }
 0x250   : > { %v1317_v47 = vadd.f32 %v1921_v24, %v2936_v28  ;;  %v1325_v28 = vadd.f32 %v1927_v4, %v2940_v55  ;;  %v1930_v24 = vadd.f32 %v1929_v48, %v1928_v43 }
 0x251   : > { %v1935_v5 = vpop.f32.mrf.mxu1  ;;  %v1923_v17 = vpop.f32.mrf.mxu0 }
 0x252   : > { %v1924_v57 = vadd.f32 %v1923_v17, %v1922_v13  ;;  %v1437_v8 = vmax.f32 %v1317_v47, 0.0  ;;  %v1660_v13 = vmul.f32 %v1507_v6, %v1436_v38  ;;  %v1542_v17 = vpop.permute.xlu1 %1541  ;;  %v1439_v33 = vmax.f32 %v1325_v28, 0.0 }
 0x253   : > { %v2990_v7 = vpop.f32.mrf.mxu1  ;;  %v1328_v39 = vadd.f32 %v1930_v24, %v2942_v30  ;;  %v1933_v47 = vadd.f32 %v1932_v49, %v1931_v15  ;;  %v1936_v48 = vadd.f32 %v1935_v5, %v1934_v2 }
 0x254   : > { %v1320_v63 = vadd.f32 %v1924_v57, %v2938_v36  ;;  %v1661_v40 = vmul.f32 %v1512_v10, %v1437_v8  ;;  %v1691_v36 = vadd.f32 %v1660_v13, %v1659_v59  ;;  %v1663_v44 = vmul.f32 %v1522_v45, %v1439_v33 }
 0x255   : > { %v2992_v9 = vpop.f32.mrf.mxu1  ;;  %v1440_v55 = vmax.f32 %v1328_v39, 0.0  ;;  %v1333_v43 = vadd.f32 %v1933_v47, %v2944_v58  ;;  %v1336_v30 = vadd.f32 %v1936_v48, %v2946_v60 }
 0x256   : > { %v1438_v21 = vmax.f32 %v1320_v63, 0.0  ;;  %v1692_v42 = vadd.f32 %v1691_v36, %v1661_v40  ;;  %v1552_v19 = vpop.permute.xlu1 %1551  ;;  %v3017_v63 = vpop.permute.xlu0 %1556  ;;  %v1939_v40 = vadd.f32 %v2992_v9, %v2990_v7 }
 0x257   : > { %v2994_v20 = vpop.f32.mrf.mxu1  ;;  %v1664_v13 = vmul.f32 %v1527_v41, %v1440_v55  ;;  %v1442_v28 = vmax.f32 %v1336_v30, 0.0 }
 0x258   : > { %v1662_v57 = vmul.f32 %v1517_v12, %v1438_v21  ;;  %v1441_v21 = vmax.f32 %v1333_v43, 0.0  ;;  %v1341_v58 = vadd.f32 %v1939_v40, %v2948_v27 }
 0x259   : > { %v2996_v14 = vpop.f32.mrf.mxu1 }
 0x25a   : > { %v1693_v38 = vadd.f32 %v1692_v42, %v1662_v57  ;;  %v1562_v12 = vpop.permute.xlu1 %1561  ;;  %v3023_v15 = vpop.permute.xlu0 %1566  ;;  %v1665_v45 = vmul.f32 %v1532_v3, %v1441_v21  ;;  %v1942_v2 = vadd.f32 %v2996_v14, %v2994_v20  ;;  %v1666_v57 = vmul.f32 %v1537_v54, %v1442_v28 }
 0x25b   : > { %v2998_v16 = vpop.f32.mrf.mxu1  ;;  %v1443_v7 = vmax.f32 %v1341_v58, 0.0 }
 0x25c   : > { %v1694_v4 = vadd.f32 %v1693_v38, %v1663_v44  ;;  %v1344_v9 = vadd.f32 %v1942_v2, %v2950_v11 }
 0x25d   : > { %v3000_v46 = vpop.f32.mrf.mxu1  ;;  %v1667_v14 = vmul.f32 %v1542_v17, %v1443_v7 }
 0x25e   : > { %v1695_v59 = vadd.f32 %v1694_v4, %v1664_v13  ;;  %v1572_v5 = vpop.permute.xlu1 %1571  ;;  %v3028_v36 = vpop.permute.xlu0 %1576  ;;  %v1945_v39 = vadd.f32 %v3000_v46, %v2998_v16  ;;  %v1444_v38 = vmax.f32 %v1344_v9, 0.0 }
 0x25f   : > { %v3002_v26 = vpop.f32.mrf.mxu1 }
 0x260   : > { %v1696_v24 = vadd.f32 %v1695_v59, %v1665_v45  ;;  %v1349_v44 = vadd.f32 %v1945_v39, %v2952_v61 }
 0x261   : > { %v3004_v23 = vpop.f32.mrf.mxu1 }
 0x262   : > { %v1697_v42 = vadd.f32 %v1696_v24, %v1666_v57  ;;  %v1948_v27 = vadd.f32 %v3004_v23, %v3002_v26  ;;  %v3035_v47 = vpop.permute.xlu1 %1581  ;;  %v3040_v55 = vpop.permute.xlu0 %1586  ;;  %v1668_v26 = vmul.f32 %v1547_v22, %v1444_v38  ;;  %v1445_v23 = vmax.f32 %v1349_v44, 0.0 }
 0x263   : > { %v3008_v52 = vpop.f32.mrf.mxu1 }
 0x264   : > { %v1698_v43 = vadd.f32 %v1697_v42, %v1667_v14  ;;  %v1352_v16 = vadd.f32 %v1948_v27, %v2954_v29  ;;  %v1669_v45 = vmul.f32 %v1552_v19, %v1445_v23  ;;  %v3120_v23 = vld [vmem:[#allocation7_spill] sm:$0xff] }
 0x265   : > { %v3011_v1 = vpop.f32.mrf.mxu1 }
 0x266   : > { %v1951_v54 = vadd.f32 %v3011_v1, %v3008_v52  ;;  %v1592_v17 = vpop.permute.xlu1 %1591  ;;  %v1699_v61 = vadd.f32 %v1698_v43, %v1668_v26  ;;  %v1446_v30 = vmax.f32 %v1352_v16, 0.0  ;;  %v1597_v1 = vpop.permute.xlu0 %1596  ;;  %v3119_v43 = vld [vmem:[#allocation6_spill] sm:$0xff] }
 0x267   : > { %v3013_v35 = vpop.f32.mrf.mxu1 }
 0x268   : > { %v1357_v4 = vadd.f32 %v1951_v54, %v2956_v56  ;;  %v1700_v22 = vadd.f32 %v1699_v61, %v1669_v45  ;;  %v1670_v58 = vmul.f32 %v3017_v63, %v1446_v30 }
 0x269   : > { %v1953_v25 = vpop.f32.mrf.mxu1 }
 0x26a   : > { %v1954_v46 = vadd.f32 %v1953_v25, %v3013_v35  ;;  %v1447_v28 = vmax.f32 %v1357_v4, 0.0  ;;  %v1602_v2 = vpop.permute.xlu1 %1601  ;;  %v1701_v9 = vadd.f32 %v1700_v22, %v1670_v58 }
 0x26b   : > { %v1955_v0 = vpop.f32.mrf.mxu1 }
 0x26c   : > { %v1360_v52 = vadd.f32 %v1954_v46, %v2958_v62  ;;  %v1671_v57 = vmul.f32 %v1562_v12, %v1447_v28  ;;  %v1607_v62 = vpop.permute.xlu0 %1606 }
 0x26d   : > { %v1956_v51 = vpop.f32.mrf.mxu1 }
 0x26e   : > { %v1957_v13 = vadd.f32 %v1956_v51, %v1955_v0  ;;  %v1448_v56 = vmax.f32 %v1360_v52, 0.0  ;;  %v1702_v42 = vadd.f32 %v1701_v9, %v1671_v57  ;;  %v1612_v27 = vpop.permute.xlu1 %1611  ;;  %v3123_v57 = vld [vmem:[#allocation10_spill] sm:$0xff] }
 0x26f   : > { %v1958_v6 = vpop.f32.mrf.mxu1 }
 0x270   : > { %v1365_v29 = vadd.f32 %v1957_v13, %v2960_v32  ;;  %v1672_v32 = vmul.f32 %v3023_v15, %v1448_v56 }
 0x271   : > { %v1959_v50 = vpop.f32.mrf.mxu1 }
 0x272   : > { %v1960_v40 = vadd.f32 %v1959_v50, %v1958_v6  ;;  %v1449_v7 = vmax.f32 %v1365_v29, 0.0  ;;  %v1703_v38 = vadd.f32 %v1702_v42, %v1672_v32 }
 0x273   : > { %v1961_v10 = vpop.f32.mrf.mxu1 }
 0x274   : > { %v1368_v51 = vadd.f32 %v1960_v40, %v2962_v37  ;;  %v1673_v37 = vmul.f32 %v1572_v5, %v1449_v7 }
 0x275   : > { %v1962_v8 = vpop.f32.mrf.mxu1 }
 0x276   : > { %v1963_v35 = vadd.f32 %v1962_v8, %v1961_v10  ;;  %v1450_v10 = vmax.f32 %v1368_v51, 0.0 }
 0x277   : > { %v1964_v49 = vpop.f32.mrf.mxu1 }
 0x278   : > { %v1373_v6 = vadd.f32 %v1963_v35, %v2964_v34  ;;  %v1617_v34 = vpop.permute.xlu0 %1616 }
 0x279   : > { %v1965_v33 = vpop.f32.mrf.mxu1 }
 0x27a   : > { %v1966_v0 = vadd.f32 %v1965_v33, %v1964_v49  ;;  %v1451_v49 = vmax.f32 %v1373_v6, 0.0 }
 0x27b   : > { %v1967_v41 = vpop.f32.mrf.mxu1 }
 0x27c   : > { %v1376_v8 = vadd.f32 %v1966_v0, %v2966_v53  ;;  %v1704_v53 = vadd.f32 %v1703_v38, %v1673_v37 }
 0x27d   : > { %v1968_v60 = vpop.f32.mrf.mxu1 }
 0x27e   : > { %v1969_v19 = vadd.f32 %v1968_v60, %v1967_v41  ;;  %v1674_v41 = vmul.f32 %v3028_v36, %v1450_v10  ;;  %v1452_v60 = vmax.f32 %v1376_v8, 0.0  ;;  %v3124_v10 = vld [vmem:[#allocation11_spill] sm:$0xff] }
 0x27f   : > { %v1970_v3 = vpop.f32.mrf.mxu1 }
 0x280   : > { %v1381_v12 = vadd.f32 %v1969_v19, %v2968_v31  ;;  %v1622_v31 = vpop.permute.xlu1 %1621 }
 0x281   : > { %v1971_v20 = vpop.f32.mrf.mxu1 }
 0x282   : > { %v1972_v63 = vadd.f32 %v1971_v20, %v1970_v3  ;;  %v1675_v3 = vmul.f32 %v3035_v47, %v1451_v49  ;;  %v1453_v20 = vmax.f32 %v1381_v12, 0.0  ;;  %v3121_v47 = vld [vmem:[#allocation8_spill] sm:$0xff] }
 0x283   : > { %v1973_v11 = vpop.f32.mrf.mxu1  ;;  %v3125_v49 = vld [vmem:[#allocation12_spill] sm:$0xff] }
 0x284   : > { %v1384_v15 = vadd.f32 %v1972_v63, %v2970_v18  ;;  %v1627_v18 = vpop.permute.xlu0 %1626  ;;  %v1677_v61 = vmul.f32 %v1592_v17, %v1453_v20  ;;  %v1632_v58 = vpop.permute.xlu1 %1631 }
 0x285   : > { %v1974_v48 = vpop.f32.mrf.mxu1 }
 0x286   : > { %v1975_v33 = vadd.f32 %v1974_v48, %v1973_v11  ;;  %v1705_v11 = vadd.f32 %v1704_v53, %v1674_v41  ;;  %v1676_v48 = vmul.f32 %v3040_v55, %v1452_v60  ;;  %v1454_v26 = vmax.f32 %v1384_v15, 0.0  ;;  %v3126_v60 = vld [vmem:[#allocation13_spill] sm:$0xff] }
 0x287   : > { %v1976_v21 = vpop.f32.mrf.mxu1 }
 0x288   : > { %v1389_v5 = vadd.f32 %v1975_v33, %v3119_v43  ;;  %v1678_v28 = vmul.f32 %v1597_v1, %v1454_v26  ;;  %v1102_v6 = vpop.permute.xlu0 %1101  ;;  %v3127_v43 = vld [vmem:[#allocation14_spill] sm:$0xff] }
 0x289   : > { %v1977_v59 = vpop.f32.mrf.mxu1 }
 0x28a   : > { %v1978_v44 = vadd.f32 %v1977_v59, %v1976_v21  ;;  %v1706_v21 = vadd.f32 %v1705_v11, %v1675_v3  ;;  %v1455_v30 = vmax.f32 %v1389_v5, 0.0 }
 0x28b   : > { %v1979_v25 = vpop.f32.mrf.mxu1 }
 0x28c   : > { %v1392_v36 = vadd.f32 %v1978_v44, %v3120_v23  ;;  %v1707_v45 = vadd.f32 %v1706_v21, %v1676_v48  ;;  %v1679_v51 = vmul.f32 %v1602_v2, %v1455_v30  ;;  %v1637_v2 = vpop.permute.xlu1 %1636 }
 0x28d   : > { %v1980_v24 = vpop.f32.mrf.mxu1 }
 0x28e   : > { %v1981_v46 = vadd.f32 %v1980_v24, %v1979_v25  ;;  %v1456_v29 = vmax.f32 %v1392_v36, 0.0  ;;  %v3122_v25 = vld [vmem:[#allocation9_spill] sm:$0xff]  ;;  %v1708_v56 = vadd.f32 %v1707_v45, %v1677_v61 }
 0x28f   : > { %v1982_v50 = vpop.f32.mrf.mxu1 }
 0x290   : > { %v1397_v40 = vadd.f32 %v1981_v46, %v3121_v47  ;;  %v1709_v19 = vadd.f32 %v1708_v56, %v1678_v28  ;;  %v1642_v26 = vpop.permute.xlu1 %1641 }
 0x291   : > { %v1983_v39 = vpop.f32.mrf.mxu1 }
 0x292   : > { %v1984_v13 = vadd.f32 %v1983_v39, %v1982_v50  ;;  %v1457_v24 = vmax.f32 %v1397_v40, 0.0  ;;  %v1680_v50 = vmul.f32 %v1607_v62, %v1456_v29  ;;  %v1710_v63 = vadd.f32 %v1709_v19, %v1679_v51  ;;  %v1107_v62 = vpop.permute.xlu0 %1106 }
 0x293   : > { %v1985_v14 = vpop.f32.mrf.mxu1 }
 0x294   : > { %v1400_v22 = vadd.f32 %v1984_v13, %v3122_v25  ;;  %v1681_v42 = vmul.f32 %v1612_v27, %v1457_v24  ;;  %v1711_v33 = vadd.f32 %v1710_v63, %v1680_v50  ;;  %v1647_v29 = vpop.permute.xlu1 %1646 }
 0x295   : > { %v1986_v54 = vpop.f32.mrf.mxu1 }
 0x296   : > { %v1987_v59 = vadd.f32 %v1986_v54, %v1985_v14  ;;  %v1458_v32 = vmax.f32 %v1400_v22, 0.0  ;;  %v1712_v53 = vadd.f32 %v1711_v33, %v1681_v42  ;;  %v1112_v21 = vpop.permute.xlu0 %1111 }
 0x297   : > { %v1988_v16 = vpop.f32.mrf.mxu1 }
 0x298   : > { %v1405_v7 = vadd.f32 %v1987_v59, %v3123_v57  ;;  %v1682_v38 = vmul.f32 %v1617_v34, %v1458_v32 }
 0x299   : > { %v1989_v4 = vpop.f32.mrf.mxu1 }
 0x29a   : > { %v1990_v55 = vadd.f32 %v1989_v4, %v1988_v16  ;;  %v1459_v37 = vmax.f32 %v1405_v7, 0.0  ;;  %v1713_v27 = vadd.f32 %v1712_v53, %v1682_v38  ;;  %v1657_v7 = vpop.permute.xlu1 %1656 }
 0x29b   : > { %v1991_v52 = vpop.f32.mrf.mxu1 }
 0x29c   : > { %v1408_v1 = vadd.f32 %v1990_v55, %v3124_v10  ;;  %v1683_v3 = vmul.f32 %v1622_v31, %v1459_v37 }
 0x29d   : > { %v1992_v35 = vpop.f32.mrf.mxu1 }
 0x29e   : > { %v1993_v17 = vadd.f32 %v1992_v35, %v1991_v52  ;;  %v1460_v41 = vmax.f32 %v1408_v1, 0.0  ;;  %v1714_v36 = vadd.f32 %v1713_v27, %v1683_v3 }
 0x29f   : > { %v1994_v0 = vpop.f32.mrf.mxu1 }
 0x2a0   : > { %v1413_v12 = vadd.f32 %v1993_v17, %v3125_v49  ;;  %v1684_v46 = vmul.f32 %v1627_v18, %v1460_v41 }
 0x2a1   : > { %v1995_v9 = vpop.f32.mrf.mxu1 }
 0x2a2   : > { %v1996_v8 = vadd.f32 %v1995_v9, %v1994_v0  ;;  %v1461_v20 = vmax.f32 %v1413_v12, 0.0  ;;  %v1715_v30 = vadd.f32 %v1714_v36, %v1684_v46 }
 0x2a3   : > { %v1997_v39 = vpop.f32.mrf.mxu1 }
 0x2a4   : > { %v1416_v15 = vadd.f32 %v1996_v8, %v3126_v60  ;;  %v1685_v34 = vmul.f32 %v1632_v58, %v1461_v20  ;;  %v1652_v58 = vpop.permute.xlu0 %1651  ;;  %v1729_v8 = vstv %s1728_s6 }
 0x2a5   : > { %v1998_v14 = vpop.f32.mrf.mxu1 }
 0x2a6   : > { %v1999_v44 = vadd.f32 %v1998_v14, %v1997_v39  ;;  %v1462_v11 = vmax.f32 %v1416_v15, 0.0  ;;  %v1716_v59 = vadd.f32 %v1715_v30, %v1685_v34 }
 0x2a7   : > { %v2000_v54 = vpop.f32.mrf.mxu1 }
 0x2a8   : > { %v1421_v5 = vadd.f32 %v1999_v44, %v3127_v43  ;;  %v1686_v52 = vmul.f32 %v1637_v2, %v1462_v11 }
 0x2a9   : > { %v2001_v16 = vpop.f32.mrf.mxu1 }
 0x2aa   : > { %v2002_v48 = vadd.f32 %v2001_v16, %v2000_v54  ;;  %v1463_v4 = vmax.f32 %v1421_v5, 0.0  ;;  %v1717_v35 = vadd.f32 %v1716_v59, %v1686_v52 }
 0x2ab   : > { %v2003_v23 = vpop.f32.mrf.mxu1 }
 0x2ac   : > { %v1424_v13 = vadd.f32 %v2002_v48, %v1102_v6  ;;  %v1687_v45 = vmul.f32 %v1642_v26, %v1463_v4 }
 0x2ad   : > { %v2004_v61 = vpop.f32.mrf.mxu1 }
 0x2ae   : > { %v1464_v47 = vmax.f32 %v1424_v13, 0.0  ;;  %v2005_v31 = vadd.f32 %v2004_v61, %v2003_v23  ;;  %v1718_v56 = vadd.f32 %v1717_v35, %v1687_v45 }
 0x2af   : > { %v2006_v40 = vpop.f32.mrf.mxu1 }
 0x2b0   : > { %v1429_v28 = vadd.f32 %v2005_v31, %v1107_v62  ;;  %v1688_v25 = vmul.f32 %v1647_v29, %v1464_v47 }
 0x2b1   : > { %v2007_v18 = vpop.f32.mrf.mxu1 }
 0x2b2   : > { %v1465_v22 = vmax.f32 %v1429_v28, 0.0  ;;  %v2008_v55 = vadd.f32 %v2007_v18, %v2006_v40  ;;  %v1719_v24 = vadd.f32 %v1718_v56, %v1688_v25 }
 0x2b4   : > { %v1689_v51 = vmul.f32 %v1652_v58, %v1465_v22  ;;  %v1432_v0 = vadd.f32 %v2008_v55, %v1112_v21 }
 0x2b6   : > { %v1466_v57 = vmax.f32 %v1432_v0, 0.0  ;;  %v1720_v17 = vadd.f32 %v1719_v24, %v1689_v51 }
 0x2b8   : > { %v1690_v6 = vmul.f32 %v1657_v7, %v1466_v57 }
 0x2ba   : > { %v1721_v19 = vadd.f32 %v1720_v17, %v1690_v6 }
 0x2bc   : > { %v1722_v50 = vrot.slane %v1721_v19, 4 }
 0x2be   : > { %v1723_v9 = vadd.f32 %v1722_v50, %v1721_v19 }
 0x2c0   : > { %v1724_v32 = vrot.slane %v1723_v9, 2 }
 0x2c2   : > { %v1725_v10 = vadd.f32 %v1724_v32, %v1723_v9 }
 0x2c4   : > { %v1726_v1 = vrot.slane %v1725_v10, 1 }
 0x2c6   : > { %v1727_v63 = vadd.f32 %v1726_v1, %v1725_v10 }
 0x2c8   : > { %v1730_v39 = vadd.f32 %v1729_v8, %v1727_v63 }
 0x2ca   : > { %1731 = vst [vmem:[%s272_s9] sm:$0x1] %v1730_v39 }
 0x2cb   : > { %2200 = shalt.err (!%p2197_p3)
}
 0x2cc   : > { %s2201_s23 = scalar_lea.hbm %s1743_s16, 16  ;;  %s2205_s25 = scalar_lea.hbm %s3107_s7, 32 }
 0x2cd   : > { %p2202_p4 = scmp.ne.s32.totalorder %s1743_s16, %s2201_s23  ;;  %p2206_p9 = scmp.lt.s32.totalorder %s1743_s16, %s3107_s7 }
 0x2ce   : > { %p2207_p10 = scmp.lt.s32.totalorder %s2205_s25, %s2201_s23 }
 0x2cf   : > { %p2203_p7 = pnand %p2202_p4, %p2329_p5 }
 0x2d0   : > { %p2208_p11 = por %p2207_p10, %p2206_p9 }
 0x2d1   : > { %p2204_p8 = pneg %p2203_p7 }
 0x2d3   : > { %p2209_p12 = pnand %p2208_p11, %p2204_p8 }
 0x2d5   : > { %2212 = shalt.err (!%p2209_p12)
}
 0x2d6   : > { %2081 = dma.vmem_to_hbm [thread:$0]  (%p2329_p5), %s1746_s10, 16, %s1743_s16, %s1733_s17  }
 0x2d7 PF: > { %p2087_p13 = scmp.ge.s32.totalorder %s2247_s29, 2  ;;  %s1757_s9 = sand.u32 1, %s2235_s26  }
 0x2d8   : > { %s1758_s14 = scalar_lea.sflag [#allocation4], %s1757_s9 }
 0x2d9   : > { %p2084_p0 = pnand %p2087_p13, %p2333_p6 }
 0x2db   : > { %p2085_p1 = pneg %p2084_p0 }
 0x2dd   : > { %2230 = dma.done.wait (%p2085_p1), %s1758_s14, 16  }
 0x2de   : > { %2232 = vsyncadd (%p2085_p1), %s1758_s14, 4294967280  ;;  %p18_p2 = scmp.ge.s32.totalorder %s2317_s8, 4   ;;  %s3128_s26 = smov %s2239_s27 }
 0x2df   : > { %s3129_s27 = smov %s2243_s28  ;;  %s3130_s28 = smov %s2327_s11 }
 0x2e0   : > { %s3131_s29 = smov %s2317_s8  ;;  %20 = sbr.rel (!%p18_p2) target bundleno = 5 (0x5), region = 83 }
 0x2e5   :  { %1762 = vsyncpa [#allocation4], 1 }
 0x2e6   :  { %1764 = vsyncpa [#allocation4 + $0x1], 1 }

</bundles_post_ra>
